<compile_context>
chip_gen: v5e
topology: v5e:2x2
jax: 0.10.0
libtpu: 0.0.40
codegen_flags: <defaults>
</compile_context>

<pallas_src>
import functools

import jax
import jax.numpy as jnp
from jax.experimental import pallas as pl
from jax.experimental.pallas import tpu as pltpu


def _round_up(x, m):
    return ((x + m - 1) // m) * m


def _cdiv(a, b):
    return (a + b - 1) // b


# Per batch tile:
#   user_emb  (TB, E)    f32 VMEM
#   item_flat (TB, M*E)  f32 VMEM   (row-major (m, e) flatten of (M, E))
#   conv_w    (M,)       f32 SMEM
#   conv_b    (1,)       f32 SMEM
#   out       (TB, 3*E)  f32 VMEM   rows = [ u | u*drr | drr ]  (== torch.cat layout)
def _state_repr_kernel(user_emb_ref, item_flat_ref, w_ref, b_ref, out_ref, *,
                       emb_dim, memory_size):
    u = user_emb_ref[...]                               # (TB, E)
    items = item_flat_ref[...]                          # (TB, M*E)
    # Conv1d(in_channels=M, out_channels=1, kernel_size=1) == weighted sum over
    # the memory axis plus a scalar bias.  M is tiny and the kernel is purely
    # HBM-bound, so keep the reduction on VPU/XLU (static lane slices) instead
    # of the MXU.
    drr = items[:, 0:emb_dim] * w_ref[0]
    for m in range(1, memory_size):
        drr = drr + items[:, m * emb_dim:(m + 1) * emb_dim] * w_ref[m]
    drr = drr + b_ref[0]
    # Stores into the (TB, 3E) block: each spans all TB sublanes of a
    # contiguous lane range.
    out_ref[:, 0:emb_dim] = u
    out_ref[:, emb_dim:2 * emb_dim] = u * drr
    out_ref[:, 2 * emb_dim:3 * emb_dim] = drr


def state_repr_forward(user, memory, params, *, block_b=2048):
    """user: (B,) int32, memory: (B, M) int32 -> (B, 3*E) float32."""
    # Glue: embedding lookups (data-dependent gathers) in plain JAX.
    user_emb = jnp.take(params["user_emb"], user, axis=0).astype(jnp.float32)    # (B, E)
    item_emb = jnp.take(params["item_emb"], memory, axis=0).astype(jnp.float32)  # (B, M, E)
    B, E = user_emb.shape
    M = item_emb.shape[1]
    # Contiguous (free) reshape: lane-dense rows of M*E floats for the dominant stream.
    item_flat = item_emb.reshape(B, M * E)
    w = params["conv_w"].reshape(M).astype(jnp.float32)   # Conv1d weight (1, M, 1) -> (M,)
    b = params["conv_b"].reshape(1).astype(jnp.float32)   # scalar bias

    # Pad the batch only to sublane granularity (8); the grid handles a ragged
    # last block, so there is no TB-sized padding / wasted HBM traffic.
    Bp = _round_up(B, 8)
    if Bp != B:
        pad = Bp - B
        user_emb = jnp.pad(user_emb, ((0, pad), (0, 0)))
        item_flat = jnp.pad(item_flat, ((0, pad), (0, 0)))

    # Batch tile: as large as possible (per-grid-step overhead ~0.35 us), but
    # once the batch is big enough keep >= ~8 grid steps so v7x's two
    # TensorCores both get work (harmless on single-core v5e/v6e).
    TB = min(block_b, Bp)
    target_steps = 8
    if Bp >= target_steps * 512:
        TB = min(TB, _round_up(_cdiv(Bp, target_steps), 8))
    TB = max(TB, 8)
    grid = (_cdiv(Bp, TB),)

    # Double-buffered VMEM footprint, accounting for (8,128) lane padding
    # (E and 3E pad up to 128 lanes; M*E is lane-dense for E a multiple of 16).
    def _row_bytes(ncols):
        return _round_up(ncols, 128) * 4

    per_block = TB * (_row_bytes(E) + _row_bytes(M * E) + _row_bytes(3 * E))
    # Default TB=2048, M=8, E=32 -> ~9 MiB; the 32 MiB floor fits every
    # generation's scoped VMEM (raises v5e's 16 MiB default, == v6e/v7x default).
    vmem_limit = int(max(2 * per_block + (2 << 20), 32 << 20))

    kernel = functools.partial(_state_repr_kernel, emb_dim=E, memory_size=M)
    out = pl.pallas_call(
        kernel,
        grid=grid,
        in_specs=[
            pl.BlockSpec((TB, E), lambda i: (i, 0)),
            pl.BlockSpec((TB, M * E), lambda i: (i, 0)),
            pl.BlockSpec(memory_space=pltpu.MemorySpace.SMEM),
            pl.BlockSpec(memory_space=pltpu.MemorySpace.SMEM),
        ],
        out_specs=pl.BlockSpec((TB, 3 * E), lambda i: (i, 0)),
        out_shape=jax.ShapeDtypeStruct((Bp, 3 * E), jnp.float32),
        compiler_params=pltpu.CompilerParams(
            dimension_semantics=("parallel",),
            vmem_limit_bytes=vmem_limit),
    )(user_emb, item_flat, w, b)

    # Rows [B:Bp] are padding; layout already matches torch.cat((u, u*drr, drr), 1).
    return out[:B]


def init_params(key, user_num, item_num, embedding_dim, memory_size):
    """Deterministic synthetic init mirroring StateReprModule.initialize()."""
    k_u, k_i, k_w = jax.random.split(key, 3)
    user_emb = 0.01 * jax.random.normal(k_u, (user_num, embedding_dim), jnp.float32)
    # NOTE: the PyTorch init zeroes the padding row *before* the normal_() call,
    # so the padding row ends up normally initialized as well; we mirror that end state.
    item_emb = 0.01 * jax.random.normal(k_i, (item_num + 1, embedding_dim), jnp.float32)
    conv_w = jax.random.uniform(k_w, (1, memory_size, 1), jnp.float32)  # Conv1d weight (out, in, k)
    conv_b = jnp.zeros((1,), jnp.float32)
    return dict(user_emb=user_emb, item_emb=item_emb, conv_w=conv_w, conv_b=conv_b)


def _reference_forward(user, memory, params):
    u = params["user_emb"][user]
    items = params["item_emb"][memory]
    w = params["conv_w"][0, :, 0]
    drr = jnp.einsum("bme,m->be", items, w) + params["conv_b"][0]
    return jnp.concatenate([u, u * drr, drr], axis=1)


if __name__ == "__main__":
    USER_NUM, ITEM_NUM = 10, 20
    EMB_DIM, MEM_SIZE = 32, 8
    BATCH = 2

    key = jax.random.PRNGKey(0)
    k_params, k_user, k_mem = jax.random.split(key, 3)

    params = init_params(k_params, USER_NUM, ITEM_NUM, EMB_DIM, MEM_SIZE)
    user = jax.random.randint(k_user, (BATCH,), 0, USER_NUM, dtype=jnp.int32)
    # memory indices may include the padding index == ITEM_NUM
    memory = jax.random.randint(k_mem, (BATCH, MEM_SIZE), 0, ITEM_NUM + 1, dtype=jnp.int32)

    out = state_repr_forward(user, memory, params)
    out = jax.block_until_ready(out)

    ref = jax.block_until_ready(_reference_forward(user, memory, params))
    assert out.shape == (BATCH, 3 * EMB_DIM)
    assert jnp.allclose(out, ref, atol=1e-5, rtol=1e-5)

    print("KERNEL_OK")
</pallas_src>

<mosaic_0001>
module attributes {stable_mosaic.version = 11 : i64} {
  func.func @_state_repr_kernel(%arg0: i32, %arg1: memref<8x32xf32, #tpu.memory_space<vmem>>, %arg2: memref<8x256xf32, #tpu.memory_space<vmem>>, %arg3: memref<8xf32, #tpu.memory_space<smem>>, %arg4: memref<1xf32, #tpu.memory_space<smem>>, %arg5: memref<8x96xf32, #tpu.memory_space<vmem>>) attributes {dimension_semantics = [#tpu.dimension_semantics<parallel>], iteration_bounds = array<i64: 1>, scalar_prefetch = 0 : i64, scratch_operands = 0 : i64, tpu.core_type = #tpu.core_type<tc>, window_params = [{transform_indices = @transform_0, window_bounds = array<i64: 8, 32>}, {transform_indices = @transform_1, window_bounds = array<i64: 8, 256>}, {transform_indices = @transform_2, window_bounds = array<i64: 8>}, {transform_indices = @transform_3, window_bounds = array<i64: 1>}, {transform_indices = @transform_4, window_bounds = array<i64: 8, 96>}]} {
    %c0 = arith.constant 0 : index
    %c0_0 = arith.constant 0 : index
    %0 = vector.load %arg1[%c0, %c0_0] : memref<8x32xf32, #tpu.memory_space<vmem>>, vector<8x32xf32>
    %c0_1 = arith.constant 0 : index
    %c0_2 = arith.constant 0 : index
    %1 = vector.load %arg2[%c0_1, %c0_2] : memref<8x256xf32, #tpu.memory_space<vmem>>, vector<8x256xf32>
    %2 = vector.extract_strided_slice %1 {offsets = [0, 0], sizes = [8, 32], strides = [1, 1]} : vector<8x256xf32> to vector<8x32xf32>
    %c0_3 = arith.constant 0 : index
    %3 = memref.load %arg3[%c0_3] : memref<8xf32, #tpu.memory_space<smem>>
    %4 = vector.broadcast %3 : f32 to vector<8x32xf32>
    %5 = arith.mulf %2, %4 : vector<8x32xf32>
    %6 = vector.extract_strided_slice %1 {offsets = [0, 32], sizes = [8, 32], strides = [1, 1]} : vector<8x256xf32> to vector<8x32xf32>
    %c1 = arith.constant 1 : index
    %7 = memref.load %arg3[%c1] : memref<8xf32, #tpu.memory_space<smem>>
    %8 = vector.broadcast %7 : f32 to vector<8x32xf32>
    %9 = arith.mulf %6, %8 : vector<8x32xf32>
    %10 = arith.addf %5, %9 : vector<8x32xf32>
    %11 = vector.extract_strided_slice %1 {offsets = [0, 64], sizes = [8, 32], strides = [1, 1]} : vector<8x256xf32> to vector<8x32xf32>
    %c2 = arith.constant 2 : index
    %12 = memref.load %arg3[%c2] : memref<8xf32, #tpu.memory_space<smem>>
    %13 = vector.broadcast %12 : f32 to vector<8x32xf32>
    %14 = arith.mulf %11, %13 : vector<8x32xf32>
    %15 = arith.addf %10, %14 : vector<8x32xf32>
    %16 = vector.extract_strided_slice %1 {offsets = [0, 96], sizes = [8, 32], strides = [1, 1]} : vector<8x256xf32> to vector<8x32xf32>
    %c3 = arith.constant 3 : index
    %17 = memref.load %arg3[%c3] : memref<8xf32, #tpu.memory_space<smem>>
    %18 = vector.broadcast %17 : f32 to vector<8x32xf32>
    %19 = arith.mulf %16, %18 : vector<8x32xf32>
    %20 = arith.addf %15, %19 : vector<8x32xf32>
    %21 = vector.extract_strided_slice %1 {offsets = [0, 128], sizes = [8, 32], strides = [1, 1]} : vector<8x256xf32> to vector<8x32xf32>
    %c4 = arith.constant 4 : index
    %22 = memref.load %arg3[%c4] : memref<8xf32, #tpu.memory_space<smem>>
    %23 = vector.broadcast %22 : f32 to vector<8x32xf32>
    %24 = arith.mulf %21, %23 : vector<8x32xf32>
    %25 = arith.addf %20, %24 : vector<8x32xf32>
    %26 = vector.extract_strided_slice %1 {offsets = [0, 160], sizes = [8, 32], strides = [1, 1]} : vector<8x256xf32> to vector<8x32xf32>
    %c5 = arith.constant 5 : index
    %27 = memref.load %arg3[%c5] : memref<8xf32, #tpu.memory_space<smem>>
    %28 = vector.broadcast %27 : f32 to vector<8x32xf32>
    %29 = arith.mulf %26, %28 : vector<8x32xf32>
    %30 = arith.addf %25, %29 : vector<8x32xf32>
    %31 = vector.extract_strided_slice %1 {offsets = [0, 192], sizes = [8, 32], strides = [1, 1]} : vector<8x256xf32> to vector<8x32xf32>
    %c6 = arith.constant 6 : index
    %32 = memref.load %arg3[%c6] : memref<8xf32, #tpu.memory_space<smem>>
    %33 = vector.broadcast %32 : f32 to vector<8x32xf32>
    %34 = arith.mulf %31, %33 : vector<8x32xf32>
    %35 = arith.addf %30, %34 : vector<8x32xf32>
    %36 = vector.extract_strided_slice %1 {offsets = [0, 224], sizes = [8, 32], strides = [1, 1]} : vector<8x256xf32> to vector<8x32xf32>
    %c7 = arith.constant 7 : index
    %37 = memref.load %arg3[%c7] : memref<8xf32, #tpu.memory_space<smem>>
    %38 = vector.broadcast %37 : f32 to vector<8x32xf32>
    %39 = arith.mulf %36, %38 : vector<8x32xf32>
    %40 = arith.addf %35, %39 : vector<8x32xf32>
    %c0_4 = arith.constant 0 : index
    %41 = memref.load %arg4[%c0_4] : memref<1xf32, #tpu.memory_space<smem>>
    %42 = vector.broadcast %41 : f32 to vector<8x32xf32>
    %43 = arith.addf %40, %42 : vector<8x32xf32>
    %c0_5 = arith.constant 0 : index
    %c0_6 = arith.constant 0 : index
    %44 = vector.load %arg5[%c0_5, %c0_6] : memref<8x96xf32, #tpu.memory_space<vmem>>, vector<8x32xf32>
    tpu.vector_store %arg5[%c0_5, %c0_6], %0 {strides = array<i32>} : memref<8x96xf32, #tpu.memory_space<vmem>>, vector<8x32xf32>,
    %45 = arith.mulf %0, %43 : vector<8x32xf32>
    %c0_7 = arith.constant 0 : index
    %c32 = arith.constant 32 : index
    %46 = vector.load %arg5[%c0_7, %c32] : memref<8x96xf32, #tpu.memory_space<vmem>>, vector<8x32xf32>
    tpu.vector_store %arg5[%c0_7, %c32], %45 {strides = array<i32>} : memref<8x96xf32, #tpu.memory_space<vmem>>, vector<8x32xf32>,
    %c0_8 = arith.constant 0 : index
    %c64 = arith.constant 64 : index
    %47 = vector.load %arg5[%c0_8, %c64] : memref<8x96xf32, #tpu.memory_space<vmem>>, vector<8x32xf32>
    tpu.vector_store %arg5[%c0_8, %c64], %43 {strides = array<i32>} : memref<8x96xf32, #tpu.memory_space<vmem>>, vector<8x32xf32>,
    return
  }
  func.func @transform_0(%arg0: i32) -> (i32, i32) {
    %c0_i32 = arith.constant 0 : i32
    %c0_i32_0 = arith.constant 0 : i32
    return %arg0, %c0_i32 : i32, i32
  }
  func.func @transform_1(%arg0: i32) -> (i32, i32) {
    %c0_i32 = arith.constant 0 : i32
    %c0_i32_0 = arith.constant 0 : i32
    return %arg0, %c0_i32 : i32, i32
  }
  func.func @transform_2(%arg0: i32) -> i32 {
    %c0_i32 = arith.constant 0 : i32
    %c0_i32_0 = arith.constant 0 : i32
    return %c0_i32 : i32
  }
  func.func @transform_3(%arg0: i32) -> i32 {
    %c0_i32 = arith.constant 0 : i32
    %c0_i32_0 = arith.constant 0 : i32
    return %c0_i32 : i32
  }
  func.func @transform_4(%arg0: i32) -> (i32, i32) {
    %c0_i32 = arith.constant 0 : i32
    %c0_i32_0 = arith.constant 0 : i32
    return %arg0, %c0_i32 : i32, i32
  }
}

</mosaic_0001>

<bundles_post_ra>
// kernel: tpu_custom_call.1
= control target key start
LH: loop header
LB: loop body
LE: loop exit
PB: predicated region body
PF: predicated region fallthrough
CT: control target
= control target key end

     0   :  { %10 = vsyncpa [#allocation4], 0  ;;  %s311_s0 = inlined_call_operand.hbm [shape: f32[8,32], index: 0, kind: input, shape index: {}]   ;;  %s312_s1 = inlined_call_operand.hbm [shape: f32[8,256], index: 1, kind: input, shape index: {}]   ;;  %s313_s2 = inlined_call_operand.vmem [shape: f32[8], index: 2, kind: input, shape index: {}]   ;;  %s314_s3 = inlined_call_operand.<no memory space> [shape: f32[1], index: 3, kind: input, shape index: {}]   ;;  %s315_s4 = inlined_call_operand.hbm [shape: f32[8,96], index: 4, kind: output, shape index: {}]  }
   0x1   :  { %11 = vsyncpa [#allocation8], 0 }
   0x2   :  { %12 = vsyncpa [#allocation6], 0 }
   0x3   :  { %13 = vsyncpa [#allocation5], 0  ;;  %s19_s17 = sshll.u32 %s311_s0, 4  ;;  %s261_s18 = smov [#allocation3]   ;;  %s20_s17 = int_to_ptr.hbm [resolvable:$true] %s19_s17 }
   0x4   :  { %s21_s19 = sshll.u32 %s261_s18, 4  ;;  %s30_s22 = sshll.u32 %s312_s1, 4  ;;  %s22_s19 = int_to_ptr.vmem [resolvable:$true] %s21_s19  ;;  %s31_s22 = int_to_ptr.hbm [resolvable:$true] %s30_s22 }
   0x5   :  { %24 = dma.hbm_to_vmem [thread:$0]  %s20_s17, 128, %s22_s19, [#allocation4]  }
   0x6   :  { %s262_s23 = smov [#allocation7]   ;;  %s41_s27 = sshll.u32 %s313_s2, 4  ;;  %s42_s27 = int_to_ptr.vmem [resolvable:$true] %s41_s27 }
   0x7   :  { %s32_s24 = sshll.u32 %s262_s23, 4  ;;  %s263_s0 = smov [#allocation9]   ;;  %s33_s24 = int_to_ptr.vmem [resolvable:$true] %s32_s24 }
   0x8   :  { %35 = dma.hbm_to_vmem [thread:$0]  %s31_s22, 256, %s33_s24, [#allocation8]  }
   0x9   :  { %44 = dma.vmem_to_smem %s42_s27, 16, %s263_s0, [#allocation6]  }
   0xa   :  { %253 = dma.done.wait [#allocation4], 128  }
   0xb   :  { %254 = vsyncadd [#allocation4], 4294967168 }
   0xc   :  { %255 = dma.done.wait [#allocation8], 256  }
   0xd   :  { %256 = vsyncadd [#allocation8], 4294967040 }
   0xe   :  { %257 = dma.done.wait [#allocation6], 16  }
   0xf   :  { %258 = vsyncadd [#allocation6], 4294967280 }
  0x10   :  { %59 = sfence }
  0x11   :  { %s155_s1 = sld [smem:[#allocation9 + $0x1]]  ;;  %v61_v0 = vld [vmem:[#allocation7] sm:$0xff]  ;;  %s264_s6 = smov 96   ;;  %v62_v6 = vld [vmem:[#allocation7 + $0x8] sm:$0xff]  ;;  %v119_v30 = vstv %s314_s3  ;;  %v60_v32 = vld [vmem:[#allocation3] sm:$0xff]  ;;  %vm121_vm0 = vcmask 261120  }
  0x12   :  { %s157_s28 = sld [smem:[#allocation9 + $0x3]]  ;;  %s265_s7 = smov 32   ;;  %122 = vst.msk [vmem:[#allocation10] sm:$0xff] %vm121_vm0, %v60_v32  ;;  %vm128_vm1 = vcmask 523520   ;;  %vm134_vm2 = vcmask 785920  }
  0x13   :  { %s156_s29 = sld [smem:[#allocation9 + $0x2]]  ;;  %s266_s8 = smov 64  }
  0x14   :  { %s159_s30 = sld [smem:[#allocation9 + $0x5]]  ;;  %s267_s13 = smov [#allocation10]  }
  0x15   :  { %s160_s5 = sld [smem:[#allocation9 + $0x6]]  ;;  %s141_s14 = sshll.u32 %s267_s13, 4  ;;  %s142_s14 = int_to_ptr.vmem [resolvable:$true] %s141_s14 }
  0x16   :  { %s161_s2 = sld [smem:[#allocation9 + $0x7]]  ;;  %s143_s17 = sshll.u32 %s315_s4, 4  ;;  %s144_s17 = int_to_ptr.hbm [resolvable:$true] %s143_s17 }
  0x17   :  { %v67_v1 = vstv %s155_s1  ;;  %s63_s9 = sld [smem:[#allocation9]] }
  0x18   :  { %v68_v2 = vmul.f32 %v67_v1, %v61_v0  ;;  %v83_v3 = vstv %s157_s28  ;;  %s158_s10 = sld [smem:[#allocation9 + $0x4]] }
  0x19   :  { %v84_v4 = vmul.f32 %v83_v3, %v61_v0  ;;  %v75_v5 = vstv %s156_s29 }
  0x1a   :  { %70 = vrot.lane.b32.xlu0 %v68_v2, %s264_s6  ;;  %v95_v8 = vstv %s159_s30  ;;  %v76_v10 = vmul.f32 %v75_v5, %v61_v0 }
  0x1b   :  { %86 = vrot.lane.b32.xlu1 %v84_v4, %s265_s7  ;;  %v103_v7 = vstv %s160_s5  ;;  %v96_v11 = vmul.f32 %v95_v8, %v62_v6 }
  0x1c   :  { %v104_v9 = vmul.f32 %v103_v7, %v62_v6  ;;  %v111_v12 = vstv %s161_s2 }
  0x1d   :  { %v112_v13 = vmul.f32 %v111_v12, %v62_v6  ;;  %v64_v14 = vstv %s63_s9 }
  0x1e   :  { %106 = vrot.lane.b32.xlu2 %v104_v9, %s266_s8  ;;  %v65_v17 = vmul.f32 %v64_v14, %v61_v0  ;;  %v91_v19 = vstv %s158_s10 }
  0x1f   :  { %v92_v23 = vmul.f32 %v91_v19, %v62_v6 }
  0x22   :  { %78 = vrot.lane.b32.xlu0 %v76_v10, %s266_s8 }
  0x23   :  { %98 = vrot.lane.b32.xlu1 %v96_v11, %s264_s6 }
  0x26   :  { %114 = vrot.lane.b32.xlu2 %v112_v13, %s265_s7 }
  0x78   :  { %v107_v18 = vpop.permute.xlu2 %106 }
  0x80   :  { %v115_v28 = vpop.permute.xlu2 %114 }
  0x8c   :  { %v71_v15 = vpop.permute.xlu0 %70 }
  0x8d   :  { %v87_v16 = vpop.permute.xlu1 %86  ;;  %v73_v20 = vadd.f32 %v71_v15, %v65_v17 }
  0x94   :  { %v79_v21 = vpop.permute.xlu0 %78 }
  0x95   :  { %v81_v22 = vadd.f32 %v79_v21, %v73_v20  ;;  %v99_v25 = vpop.permute.xlu1 %98 }
  0x97   :  { %v89_v24 = vadd.f32 %v87_v16, %v81_v22 }
  0x99   :  { %v93_v26 = vadd.f32 %v92_v23, %v89_v24 }
  0x9b   :  { %v101_v27 = vadd.f32 %v99_v25, %v93_v26 }
  0x9d   :  { %v109_v29 = vadd.f32 %v107_v18, %v101_v27 }
  0x9f   :  { %v117_v31 = vadd.f32 %v115_v28, %v109_v29 }
  0xa1   :  { %v120_v33 = vadd.f32 %v119_v30, %v117_v31 }
  0xa3   :  { %131 = vrot.lane.b32.xlu1 %v120_v33, %s266_s8  ;;  %v123_v34 = vmul.f32 %v120_v33, %v60_v32 }
  0xa5   :  { %125 = vrot.lane.b32.xlu0 %v123_v34, %s265_s7 }
 0x115   :  { %v132_v36 = vpop.permute.xlu1 %131 }
 0x117   :  { %v126_v35 = vpop.permute.xlu0 %125 }
 0x118   :  { %129 = vst.msk [vmem:[#allocation10] sm:$0xff] %vm128_vm1, %v126_v35 }
 0x119   :  { %135 = vst.msk [vmem:[#allocation10] sm:$0xff] %vm134_vm2, %v132_v36 }
 0x11a   :  { %146 = dma.vmem_to_hbm [thread:$0]  %s142_s14, 128, %s144_s17, [#allocation5]  }
 0x11b   :  { %259 = dma.done.wait [#allocation5], 128  }
 0x11c   :  { %260 = vsyncadd [#allocation5], 4294967168 }
 0x11d   :  { %151 = vsyncpa [#allocation4], 1 }
 0x11e   :  { %152 = vsyncpa [#allocation8], 1 }
 0x11f   :  { %153 = vsyncpa [#allocation5], 1 }
 0x120   :  { %154 = vsyncpa [#allocation6], 1 }

</bundles_post_ra>
